<compile_context>
chip_gen: v7x
topology: tpu7x:2x2x1
jax: 0.10.0
libtpu: 0.0.40
codegen_flags: <defaults>
</compile_context>

<pallas_src>
import functools

import jax
import jax.numpy as jnp
import numpy as np
from jax.experimental import pallas as pl
from jax.experimental.pallas import tpu as pltpu

_LANE = 128


def _round_up(a: int, b: int) -> int:
    return (a + b - 1) // b * b


def _tensor_split_bounds(length: int, n_chunks: int):
    """Replicates torch.tensor_split boundaries along an axis of `length`."""
    q, r = divmod(length, n_chunks)
    bounds, start = [], 0
    for i in range(n_chunks):
        size = q + 1 if i < r else q
        bounds.append((start, size))
        start += size
    return bounds


def _pooling_matrix(T: int, n_out_frames: int, T_pad: int, dtype) -> jax.Array:
    """Static (n_out_frames, T_pad) averaging matrix; padded columns are 0."""
    P = np.zeros((n_out_frames, T_pad), dtype=np.float32)
    for i, (start, size) in enumerate(_tensor_split_bounds(T, n_out_frames)):
        P[i, start:start + size] = 1.0 / float(size)
    return jnp.asarray(P, dtype=dtype)


def _pick_bb(B: int) -> int:
    """Batch rows folded into each block.

    Keeps >= 2 'parallel' groups whenever B >= 2 (so both v7x TensorCores get
    work; neutral on v5e/v6e) and caps the in-kernel unroll at 8 rows.
    """
    if B <= 1:
        return 1
    for cand in range(min(8, B // 2), 0, -1):
        if B % cand == 0:
            return cand
    return 1


def _mean_pooling_kernel(p_ref, x_ref, o_ref, acc_ref, *, tk, bb):
    # p_ref:   (n_out_frames, T_pad)  resident pooling weights (x dtype / f32)
    # x_ref:   (bb, tk, D)            streamed input tile (bb batch rows)
    # o_ref:   (bb, n_out_frames, D)  output block (constant along the k axis)
    # acc_ref: (bb, n_out_frames, D)  f32 VMEM accumulator
    k = pl.program_id(1)

    @pl.when(k == 0)
    def _init():
        acc_ref[...] = jnp.zeros_like(acc_ref)

    # Slice the k-th column tile of the resident P block. The start is a
    # multiple of 128 and tk is a multiple of 128, so this is a lane-aligned
    # view (no relayout copy). Ragged chunk boundaries are baked into P, so
    # the reduction over T runs on the MXU with f32 accumulation; the x tile
    # is consumed in its native dtype (no explicit f32 cast).
    t0 = pl.multiple_of(k * tk, _LANE)
    p_tile = p_ref[:, pl.ds(t0, tk)]
    for i in range(bb):  # small static unroll over the folded batch rows
        acc_ref[i] += jnp.dot(p_tile, x_ref[i],
                              preferred_element_type=jnp.float32)

    @pl.when(k == pl.num_programs(1) - 1)
    def _finalize():
        # Single dense full-block store (no per-chunk masked partial stores).
        o_ref[...] = acc_ref[...].astype(o_ref.dtype)


def mean_pooling(x: jax.Array, n_out_frames: int, *,
                 block_bytes: int = 2 << 20) -> jax.Array:
    assert x.ndim == 3
    B, T, D = x.shape
    assert T >= n_out_frames

    itemsize = jnp.dtype(x.dtype).itemsize
    d_pad = _round_up(D, _LANE)  # VMEM lane-pads the minor dim to 128

    # Batch rows per block (folded); must leave room for at least a tk=128
    # tile within the per-buffer budget (budget is in *lane-padded* bytes).
    bb = _pick_bb(B)
    if bb * _LANE * d_pad * itemsize > block_bytes:
        bb = 1
    # TODO(synk): for very large D (128 * round_up(D,128) * itemsize >
    # block_bytes) also tile D with an extra "parallel" grid axis.

    # T rows per block: multiple of 128, sized from the lane-padded footprint.
    tk = (block_bytes // (bb * d_pad * itemsize)) // _LANE * _LANE
    tk = max(_LANE, min(tk, _round_up(T, _LANE)))
    t_pad = pl.cdiv(T, tk) * tk
    n_k = t_pad // tk
    n_groups = B // bb

    if t_pad != T:
        # Zero padding; the corresponding P columns are zero, so the padded
        # rows contribute nothing to the pooled means.
        x = jnp.pad(x, ((0, 0), (0, t_pad - T), (0, 0)))

    # Native low-precision MXU path for bf16/fp16 (f32 accumulation via
    # preferred_element_type); keep f32 weights for f32 inputs.
    low_prec = x.dtype in (jnp.bfloat16, jnp.float16)
    p_dtype = x.dtype if low_prec else jnp.float32
    P = _pooling_matrix(T, n_out_frames, t_pad, p_dtype)

    kernel = functools.partial(_mean_pooling_kernel, tk=tk, bb=bb)

    grid_spec = pltpu.PrefetchScalarGridSpec(
        num_scalar_prefetch=0,
        grid=(n_groups, n_k),
        in_specs=[
            # P: single resident block — block index never changes, so it is
            # DMA'd from HBM exactly once for the whole kernel.
            pl.BlockSpec((n_out_frames, t_pad), lambda g, k: (0, 0)),
            # x: streamed (bb, tk, D) tiles.
            pl.BlockSpec((bb, tk, D), lambda g, k: (g, k, 0)),
        ],
        out_specs=pl.BlockSpec((bb, n_out_frames, D), lambda g, k: (g, 0, 0)),
        scratch_shapes=[pltpu.VMEM((bb, n_out_frames, D), jnp.float32)],
    )

    return pl.pallas_call(
        kernel,
        grid_spec=grid_spec,
        out_shape=jax.ShapeDtypeStruct((B, n_out_frames, D), x.dtype),
        compiler_params=pltpu.CompilerParams(
            dimension_semantics=("parallel", "arbitrary"),
        ),
    )(P, x)


def mean_pooling_ref(x: jax.Array, n_out_frames: int) -> jax.Array:
    """Pure-JAX reference mirroring torch.tensor_split + mean + stack."""
    B, T, D = x.shape
    bounds = _tensor_split_bounds(T, n_out_frames)
    chunks = [jnp.mean(x[:, s:s + l, :].astype(jnp.float32), axis=1)
              for (s, l) in bounds]
    return jnp.stack(chunks, axis=1).astype(x.dtype)


if __name__ == "__main__":
    key = jax.random.PRNGKey(0)

    # Case 1: ragged split. B=2, T=19, D=32, n=5 -> chunk sizes [4,4,4,4,3].
    x1 = jax.random.normal(key, (2, 19, 32), dtype=jnp.float32)
    o1 = jax.block_until_ready(mean_pooling(x1, 5))
    r1 = jax.block_until_ready(mean_pooling_ref(x1, 5))
    np.testing.assert_allclose(np.asarray(o1), np.asarray(r1),
                               rtol=1e-5, atol=1e-5)
    assert o1.shape == (2, 5, 32) and o1.dtype == x1.dtype

    # Case 2: even split, lane-aligned T.
    x2 = jax.random.normal(jax.random.PRNGKey(1), (2, 384, 32),
                           dtype=jnp.float32)
    o2 = jax.block_until_ready(mean_pooling(x2, 8))
    r2 = jax.block_until_ready(mean_pooling_ref(x2, 8))
    np.testing.assert_allclose(np.asarray(o2), np.asarray(r2),
                               rtol=1e-5, atol=1e-5)
    assert o2.shape == (2, 8, 32)

    # Case 3: B=4 exercises the folded-batch path (bb=2, two parallel groups).
    x3 = jax.random.normal(jax.random.PRNGKey(2), (4, 300, 64),
                           dtype=jnp.float32)
    o3 = jax.block_until_ready(mean_pooling(x3, 7))
    r3 = jax.block_until_ready(mean_pooling_ref(x3, 7))
    np.testing.assert_allclose(np.asarray(o3), np.asarray(r3),
                               rtol=1e-5, atol=1e-5)
    assert o3.shape == (4, 7, 64)

    # Case 4: bf16 input -> native bf16 MXU path (P in bf16, f32 accumulation).
    x4 = jax.random.normal(jax.random.PRNGKey(3), (2, 50, 32),
                           dtype=jnp.float32).astype(jnp.bfloat16)
    o4 = jax.block_until_ready(mean_pooling(x4, 6))
    r4 = jax.block_until_ready(mean_pooling_ref(x4, 6))
    np.testing.assert_allclose(np.asarray(o4.astype(jnp.float32)),
                               np.asarray(r4.astype(jnp.float32)),
                               rtol=3e-2, atol=3e-2)
    assert o4.dtype == jnp.bfloat16

    print("KERNEL_OK")
</pallas_src>

<mosaic_0001>
module attributes {stable_mosaic.version = 11 : i64} {
  func.func @_mean_pooling_kernel(%arg0: i32, %arg1: i32, %arg2: memref<5x128xf32, #tpu.memory_space<vmem>>, %arg3: memref<1x128x32xf32, #tpu.memory_space<vmem>>, %arg4: memref<1x5x32xf32, #tpu.memory_space<vmem>>, %arg5: memref<1x5x32xf32, #tpu.memory_space<vmem>>) attributes {dimension_semantics = [#tpu.dimension_semantics<parallel>, #tpu.dimension_semantics<arbitrary>], iteration_bounds = array<i64: 2, 1>, scalar_prefetch = 0 : i64, scratch_operands = 1 : i64, tpu.core_type = #tpu.core_type<tc>, window_params = [{pipeline_mode = #tpu.pipeline_mode<synchronous>, transform_indices = @transform_0, window_bounds = array<i64: 5, 128>}, {transform_indices = @transform_1, window_bounds = array<i64: 1, 128, 32>}, {transform_indices = @transform_2, window_bounds = array<i64: 1, 5, 32>}]} {
    %c0_i32 = arith.constant 0 : i32
    %0 = arith.cmpi eq, %arg1, %c0_i32 : i32
    %1 = arith.extui %0 : i1 to i32
    %c0_i32_0 = arith.constant 0 : i32
    %2 = arith.cmpi ne, %1, %c0_i32_0 : i32
    scf.if %2 {
      %cst_12 = arith.constant 0.000000e+00 : f32
      %19 = vector.broadcast %cst_12 : f32 to vector<1x5x32xf32>
      %c0_13 = arith.constant 0 : index
      %c0_14 = arith.constant 0 : index
      %c0_15 = arith.constant 0 : index
      %20 = vector.load %arg5[%c0_13, %c0_14, %c0_15] : memref<1x5x32xf32, #tpu.memory_space<vmem>>, vector<1x5x32xf32>
      tpu.vector_store %arg5[%c0_13, %c0_14, %c0_15], %19 {strides = array<i32>} : memref<1x5x32xf32, #tpu.memory_space<vmem>>, vector<1x5x32xf32>,
    } else {
    }
    %c128_i32 = arith.constant 128 : i32
    %3 = arith.muli %arg1, %c128_i32 : i32
    %4 = tpu.assume_multiple %3, 128 : i32
    %c0 = arith.constant 0 : index
    %5 = arith.index_cast %4 : i32 to index
    %6 = vector.load %arg2[%c0, %5] : memref<5x128xf32, #tpu.memory_space<vmem>>, vector<5x128xf32>
    %c0_1 = arith.constant 0 : index
    %c0_2 = arith.constant 0 : index
    %c0_3 = arith.constant 0 : index
    %7 = vector.load %arg5[%c0_1, %c0_2, %c0_3] : memref<1x5x32xf32, #tpu.memory_space<vmem>>, vector<1x5x32xf32>
    %8 = vector.shape_cast %7 : vector<1x5x32xf32> to vector<5x32xf32>
    %c0_4 = arith.constant 0 : index
    %c0_5 = arith.constant 0 : index
    %c0_6 = arith.constant 0 : index
    %9 = vector.load %arg3[%c0_4, %c0_5, %c0_6] : memref<1x128x32xf32, #tpu.memory_space<vmem>>, vector<1x128x32xf32>
    %10 = vector.shape_cast %9 : vector<1x128x32xf32> to vector<128x32xf32>
    %cst = arith.constant dense<0.000000e+00> : vector<5x32xf32>
    %11 = tpu.matmul %6, %10, %cst {dimension_numbers = #tpu.dot_dimension_numbers<[1], [0], [0], [1], [0, 0, 1, 1], [], []>} : vector<5x128xf32>, vector<128x32xf32>, vector<5x32xf32> -> vector<5x32xf32>
    %12 = arith.addf %8, %11 : vector<5x32xf32>
    %c0_7 = arith.constant 0 : index
    %c0_8 = arith.constant 0 : index
    %c0_9 = arith.constant 0 : index
    %13 = vector.load %arg5[%c0_7, %c0_8, %c0_9] : memref<1x5x32xf32, #tpu.memory_space<vmem>>, vector<1x5x32xf32>
    %14 = vector.shape_cast %13 : vector<1x5x32xf32> to vector<5x32xf32>
    %15 = vector.shape_cast %12 : vector<5x32xf32> to vector<1x5x32xf32>
    tpu.vector_store %arg5[%c0_7, %c0_8, %c0_9], %15 {strides = array<i32>} : memref<1x5x32xf32, #tpu.memory_space<vmem>>, vector<1x5x32xf32>,
    %c0_i32_10 = arith.constant 0 : i32
    %16 = arith.cmpi eq, %arg1, %c0_i32_10 : i32
    %17 = arith.extui %16 : i1 to i32
    %c0_i32_11 = arith.constant 0 : i32
    %18 = arith.cmpi ne, %17, %c0_i32_11 : i32
    scf.if %18 {
      %c0_12 = arith.constant 0 : index
      %c0_13 = arith.constant 0 : index
      %c0_14 = arith.constant 0 : index
      %19 = vector.load %arg5[%c0_12, %c0_13, %c0_14] : memref<1x5x32xf32, #tpu.memory_space<vmem>>, vector<1x5x32xf32>
      %c0_15 = arith.constant 0 : index
      %c0_16 = arith.constant 0 : index
      %c0_17 = arith.constant 0 : index
      %20 = vector.load %arg4[%c0_15, %c0_16, %c0_17] : memref<1x5x32xf32, #tpu.memory_space<vmem>>, vector<1x5x32xf32>
      tpu.vector_store %arg4[%c0_15, %c0_16, %c0_17], %19 {strides = array<i32>} : memref<1x5x32xf32, #tpu.memory_space<vmem>>, vector<1x5x32xf32>,
    } else {
    }
    return
  }
  func.func @transform_0(%arg0: i32, %arg1: i32) -> (i32, i32) {
    %c0_i32 = arith.constant 0 : i32
    %c0_i32_0 = arith.constant 0 : i32
    %c0_i32_1 = arith.constant 0 : i32
    return %c0_i32, %c0_i32_0 : i32, i32
  }
  func.func @transform_1(%arg0: i32, %arg1: i32) -> (i32, i32, i32) {
    %c0_i32 = arith.constant 0 : i32
    %c0_i32_0 = arith.constant 0 : i32
    return %arg0, %arg1, %c0_i32 : i32, i32, i32
  }
  func.func @transform_2(%arg0: i32, %arg1: i32) -> (i32, i32, i32) {
    %c0_i32 = arith.constant 0 : i32
    %c0_i32_0 = arith.constant 0 : i32
    %c0_i32_1 = arith.constant 0 : i32
    return %arg0, %c0_i32, %c0_i32_0 : i32, i32, i32
  }
}

</mosaic_0001>

<bundles_post_ra>
// kernel: tpu_custom_call.1
= control target key start
LH: loop header
LB: loop body
LE: loop exit
PB: predicated region body
PF: predicated region fallthrough
CT: control target
= control target key end

     0   :  { %s500_s9 = smov 0   ;;  %s502_s10 = smov 0   ;;  %s561_s0 = inlined_call_operand.vmem [shape: f32[5,128], index: 0, kind: input, shape index: {}]   ;;  %s562_s1 = inlined_call_operand.vmem [shape: f32[2,128,32], index: 1, kind: input, shape index: {}]   ;;  %s563_s2 = inlined_call_operand.vmem [shape: f32[2,5,32], index: 2, kind: output, shape index: {}]  }
   0x1   :  { %s504_s11 = smov 0  }
   0x2 LB: > { %s24_s12 = sadd.s32 1, %s476_s10  ;;  %p348_p0 = scmp.ge.s32.totalorder %s480_s11, 1  ;;  %s480_s11 = sphi %s504_s11, %s12_s11   ;;  %s476_s10 = sphi %s502_s10, %s565_s10   ;;  %s472_s9 = sphi %s500_s9, %s564_s9  }
   0x3   : > { %p26_p1 = scmp.ge.s32.totalorder %s24_s12, 2  ;;  %p131_p2 = scmp.lt.s32.totalorder %s480_s11, 3 }
   0x5   : > { %s567_s12 = smov (%p26_p1, %s24_s12), 0  ;;  %p132_p3 = pnand %p348_p0, %p131_p2 }
   0x6   : > { %p157_p4 = scmp.lt.s32.totalorder (!%p132_p3), %s472_s9, 1  ;;  %vm174_vm0 = vcmask (!%p132_p3), 258048   ;;  %v482_v0 = vmov (!%p132_p3), 0.0|0.0   ;;  %v483_v1 = vmov (!%p132_p3), 0.0   ;;  %vm484_vm1 = vmmov (!%p132_p3), 0  }
   0x7   : > { %135 = sbr.rel (%p132_p3) target bundleno = 274 (0x112), region = 28  ;;  %407 = vmatprep.subr.bf16.mxu0 (!%p132_p3), %v482_v0  ;;  %175 = vst.msk [vmem:[#allocation2] sm:$0x1f] (!%p132_p3), %vm174_vm0, %v483_v1  ;;  %404 = vmatprep.mubr.msk.f32.mxu0 (!%p132_p3), %vm484_vm1, %v483_v1  ;;  %v180_v26 = vld [vmem:[%s561_s0] sm:$0x1f] (!%p132_p3) }
   0xe   : > { %s569_s9 = smov (!%p157_p4, %s472_s9), 1  ;;  %v181_v27 = vld [vmem:[#allocation2] sm:$0x1f] }
   0xf   : > { %s354_s13 = sshll.u32 %s569_s9, 7  ;;  %s351_s19 = sshll.u32 %s569_s9, 3 }
  0x10   : > { %s525_s16 = scalar_lea.vmem %s562_s1, %s354_s13  ;;  %s169_s22 = scalar_lea.vmem %s563_s2, %s351_s19 }
  0x11   : > { %v182_v2 = vld [vmem:[%s525_s16] sm:$0xff]  ;;  %v183_v3 = vld [vmem:[%s525_s16 + $0x8] sm:$0xff]  ;;  %v184_v4 = vld [vmem:[%s525_s16 + $0x10] sm:$0xff] }
  0x12   : > { %v408_v5 = vpack.c.bf16 %v183_v3, %v182_v2  ;;  %v185_v6 = vld [vmem:[%s525_s16 + $0x18] sm:$0xff]  ;;  %v186_v8 = vld [vmem:[%s525_s16 + $0x20] sm:$0xff]  ;;  %v187_v9 = vld [vmem:[%s525_s16 + $0x28] sm:$0xff] }
  0x13   : > { %v411_v7 = vpack.c.bf16 %v185_v6, %v184_v4  ;;  %v414_v10 = vpack.c.bf16 %v187_v9, %v186_v8  ;;  %v188_v11 = vld [vmem:[%s525_s16 + $0x30] sm:$0xff]  ;;  %v189_v12 = vld [vmem:[%s525_s16 + $0x38] sm:$0xff]  ;;  %v190_v14 = vld [vmem:[%s525_s16 + $0x40] sm:$0xff] }
  0x14   : > { %409 = vmatpush3.bf16.msra.mxu0 %v408_v5  ;;  %v417_v13 = vpack.c.bf16 %v189_v12, %v188_v11  ;;  %v191_v15 = vld [vmem:[%s525_s16 + $0x48] sm:$0xff]  ;;  %v192_v17 = vld [vmem:[%s525_s16 + $0x50] sm:$0xff]  ;;  %v193_v18 = vld [vmem:[%s525_s16 + $0x58] sm:$0xff] }
  0x15   : > { %410 = vmatprep.subr.bf16.mxu0 %v482_v0  ;;  %v420_v16 = vpack.c.bf16 %v191_v15, %v190_v14  ;;  %v423_v19 = vpack.c.bf16 %v193_v18, %v192_v17  ;;  %v194_v20 = vld [vmem:[%s525_s16 + $0x60] sm:$0xff]  ;;  %v195_v21 = vld [vmem:[%s525_s16 + $0x68] sm:$0xff]  ;;  %v196_v23 = vld [vmem:[%s525_s16 + $0x70] sm:$0xff] }
  0x16   : > { %v426_v22 = vpack.c.bf16 %v195_v21, %v194_v20  ;;  %v197_v24 = vld [vmem:[%s525_s16 + $0x78] sm:$0xff] }
  0x17   : > { %v429_v25 = vpack.c.bf16 %v197_v24, %v196_v23 }
  0x18   : > { %412 = vmatpush3.bf16.msra.mxu0 %v411_v7 }
  0x19   : > { %413 = vmatprep.subr.bf16.mxu0 %v482_v0 }
  0x1c   : > { %415 = vmatpush3.bf16.msra.mxu0 %v414_v10 }
  0x1d   : > { %416 = vmatprep.subr.bf16.mxu0 %v482_v0 }
  0x20   : > { %418 = vmatpush3.bf16.msra.mxu0 %v417_v13 }
  0x21   : > { %419 = vmatprep.subr.bf16.mxu0 %v482_v0 }
  0x24   : > { %421 = vmatpush3.bf16.msra.mxu0 %v420_v16 }
  0x25   : > { %422 = vmatprep.subr.bf16.mxu0 %v482_v0 }
  0x28   : > { %424 = vmatpush3.bf16.msra.mxu0 %v423_v19 }
  0x29   : > { %425 = vmatprep.subr.bf16.mxu0 %v482_v0 }
  0x2c   : > { %427 = vmatpush3.bf16.msra.mxu0 %v426_v22 }
  0x2d   : > { %428 = vmatprep.subr.bf16.mxu0 %v482_v0 }
  0x30   : > { %430 = vmatpush3.bf16.msra.mxu0 %v429_v25 }
  0x33   : > { %405 = vmatmul.mubr.f32.vlgmr.msra.gmra.mrb[0].mxu0 %v180_v26 }
 0x106   : > { %v264_v28 = vpop.f32.mrb[0].mxu0 }
 0x107   : > { %v268_v29 = vadd.f32 %v264_v28, %v181_v27  ;;  %v406_v30 = vpop.f32.mrb[1].mxu0 }
 0x109   : > { %270 = vst.msk [vmem:[#allocation2] sm:$0x1f] %vm174_vm0, %v268_v29 }
 0x110   : > { %v274_v31 = vld [vmem:[#allocation2] sm:$0x1f] }
 0x111   : > { %275 = vst.msk [vmem:[%s169_s22] sm:$0x1f] %vm174_vm0, %v274_v31 }
 0x112 PF: > { %s12_s11 = sadd.s32 1, %s480_s11   ;;  %s564_s9 = smov %s476_s10 }
 0x113   : > { %p9_p5 = scmp.ge.s32.totalorder %s12_s11, 4   ;;  %s565_s10 = smov %s567_s12 }
 0x115   :  { %11 = sbr.rel (!%p9_p5) target bundleno = 2 (0x2), region = 67 }

</bundles_post_ra>
